<compile_context>
chip_gen: v7x
topology: tpu7x:2x2x1
jax: 0.10.0
libtpu: 0.0.40
codegen_flags: <defaults>
</compile_context>

<pallas_src>
import functools

import jax
import jax.numpy as jnp
from jax.experimental import pallas as pl
from jax.experimental.pallas import tpu as pltpu

_NEG_INF = -1e30  # bias for padded vocab columns (exp() underflows to exactly 0)


def _round_up(n, m):
    return ((n + m - 1) // m) * m


def _vmem_capacity_bytes():
    """Physical VMEM per core; conservative (v7x, 64 MiB) fallback if the query fails."""
    try:
        cap = getattr(pltpu.get_tpu_info(), "vmem_capacity_bytes", None)
        if cap:
            return int(cap)
    except Exception:
        pass
    return 64 * 1024 * 1024


def _ctc_decoder_kernel(x_ref, w_ref, b_ref, o_ref, *, v_out):
    # x_ref : (TM, H)  w_ref : (H, Vp)  b_ref : (1, Vp) f32  o_ref : (TM, v_out)
    logits = jnp.dot(x_ref[...], w_ref[...], preferred_element_type=jnp.float32)
    logits = logits + b_ref[...]

    # Numerically stable log-softmax over the lane-dense (padded) vocab axis.
    m = jnp.max(logits, axis=-1, keepdims=True)
    # TODO(synk): on v6e/v7x evaluate bf16 exp (EUP supports bf16) for the EUP-bound
    # small-H regime; keep max/log/subtract in f32 and validate vs. 1e-3 tolerance.
    lse = m + jnp.log(jnp.sum(jnp.exp(logits - m), axis=-1, keepdims=True))
    logprobs = logits - lse

    if v_out != logprobs.shape[-1]:
        # Drop padded vocab columns here (masked vst.msk stores) instead of an extra
        # full (M, Vp) read+write unpad pass in XLA after the kernel.
        logprobs = logprobs[:, :v_out]
    o_ref[...] = logprobs.astype(o_ref.dtype)


def _choose_tile_m(M, H, Vp, V, *, x_item, w_item, out_item, desired, budget_bytes,
                   single_buffer_const):
    """Largest row tile (multiple of 8, <= desired) whose VMEM footprint fits budget."""
    tm = max(8, min(_round_up(desired, 8), _round_up(M, 8)))
    # Keep grid_m >= 2 so both TensorCores get work on v7x's megacore split of the
    # single "parallel" axis; negligible per-step overhead on 1-TC generations.
    if M > 8:
        tm = min(tm, max(8, _round_up(pl.cdiv(M, 2), 8)))
    w_bufs = 1 if single_buffer_const else 2
    fixed = w_bufs * (Vp * H * w_item + Vp * 4)          # resident W^T + f32 bias
    # Double-buffered x/out tiles + ~3 (TM, Vp) f32 epilogue temps (logits/exp/logprobs)
    # to cover Mosaic internal scratch.
    per_row = 2 * H * x_item + 2 * V * out_item + 3 * Vp * 4
    while tm > 8 and fixed + tm * per_row > budget_bytes:
        tm = max(8, (tm // 2 // 8) * 8)
    return tm


def ctc_decoder_forward(x, weight, bias, *, tile_m=512, use_bf16_matmul=True):
    """x: (batch, seq, hidden).  weight: (index_dim, hidden) (PyTorch nn.Linear layout).
    bias: (index_dim,).  Returns (batch, seq, index_dim) log-probabilities."""
    B, S, H = x.shape
    V, Hw = weight.shape
    assert Hw == H and bias.shape == (V,)
    M = B * S

    compute_dtype = jnp.bfloat16 if use_bf16_matmul else x.dtype
    out_dtype = x.dtype  # TODO(synk): expose bf16 output for writeback-bound v5e callers.

    # Lane-dense vocab axis: pad V up to a multiple of 128. Padded weight rows are 0 and
    # padded bias entries -1e30 so padded classes contribute exp()==0 to the f32 LSE.
    Vp = _round_up(V, 128)
    b2d = bias.astype(jnp.float32)
    if Vp != V:
        weight = jnp.pad(weight, ((0, Vp - V), (0, 0)))
        b2d = jnp.pad(b2d, (0, Vp - V), constant_values=_NEG_INF)
    b2d = b2d.reshape(1, Vp)

    # One-time wrapper-side layout/dtype prep (instead of per-grid-step kernel work):
    # bf16 halves DMA bytes + weight VMEM residency; (H, Vp) puts the contraction dim
    # on the RHS second-minor axis (MXU-preferred) with a 128-multiple lane dim.
    w_t = weight.T.astype(compute_dtype)            # (H, Vp)
    x2d = x.reshape(M, H).astype(compute_dtype)     # (M, H)

    vmem_cap = _vmem_capacity_bytes()
    vmem_limit = int(min(vmem_cap * 3 // 4, 96 * 1024 * 1024))  # ~48 MiB v7x, ~96 MiB v5e/v6e
    budget = vmem_limit * 2 // 3

    out_item = jnp.dtype(out_dtype).itemsize
    cost = pl.CostEstimate(
        flops=2 * M * H * Vp,
        transcendentals=M * Vp,  # one exp per (padded) logit
        bytes_accessed=int(x2d.size * x2d.dtype.itemsize
                           + w_t.size * w_t.dtype.itemsize
                           + b2d.size * 4
                           + M * V * out_item),
    )

    def run(single_buffer_const):
        tm = _choose_tile_m(
            M, H, Vp, V,
            x_item=x2d.dtype.itemsize, w_item=w_t.dtype.itemsize, out_item=out_item,
            desired=tile_m, budget_bytes=budget,
            single_buffer_const=single_buffer_const)
        grid_m = pl.cdiv(M, tm)  # no concat padding; OOB rows of last block are masked
        const_kw = dict(pipeline_mode=pl.Buffered(1)) if single_buffer_const else {}
        return pl.pallas_call(
            functools.partial(_ctc_decoder_kernel, v_out=V),
            out_shape=jax.ShapeDtypeStruct((M, V), out_dtype),
            grid_spec=pltpu.PrefetchScalarGridSpec(
                num_scalar_prefetch=0,
                grid=(grid_m,),
                in_specs=[
                    pl.BlockSpec((tm, H), lambda i: (i, 0)),              # x row tile
                    pl.BlockSpec((H, Vp), lambda i: (0, 0), **const_kw),  # resident W^T
                    pl.BlockSpec((1, Vp), lambda i: (0, 0), **const_kw),  # resident bias
                ],
                out_specs=pl.BlockSpec((tm, V), lambda i: (i, 0)),
            ),
            compiler_params=pltpu.CompilerParams(
                dimension_semantics=("parallel",),
                vmem_limit_bytes=vmem_limit,
            ),
            cost_estimate=cost,
        )(x2d, w_t, b2d)

    try:
        out = run(single_buffer_const=True)
    except Exception:
        # This jax/Mosaic build rejected pipeline_mode=pl.Buffered(1) on a constant
        # block; fall back to default double-buffered constant blocks (same math).
        out = run(single_buffer_const=False)

    return out.reshape(B, S, V)


if __name__ == "__main__":
    # Small shapes consistent with the module's forward.
    batch, seq, hidden_dim, index_dim = 2, 8, 32, 16

    key = jax.random.PRNGKey(0)
    kx, kw, kb = jax.random.split(key, 3)

    x = jax.random.normal(kx, (batch, seq, hidden_dim), dtype=jnp.float32)
    # nn.Linear-style uniform(-1/sqrt(fan_in), 1/sqrt(fan_in)) init.
    bound = 1.0 / (hidden_dim ** 0.5)
    weight = jax.random.uniform(kw, (index_dim, hidden_dim),
                                minval=-bound, maxval=bound, dtype=jnp.float32)
    bias = jax.random.uniform(kb, (index_dim,),
                              minval=-bound, maxval=bound, dtype=jnp.float32)

    out = ctc_decoder_forward(x, weight, bias)
    out = jax.block_until_ready(out)
    assert out.shape == (batch, seq, index_dim)
    assert bool(jnp.all(jnp.isfinite(out)))

    # Reference with matched matmul precision (bf16 inputs, f32 accumulation).
    ref_logits_bf16 = jnp.dot(x.astype(jnp.bfloat16), weight.T.astype(jnp.bfloat16),
                              preferred_element_type=jnp.float32) + bias
    ref_bf16 = jax.nn.log_softmax(ref_logits_bf16, axis=-1)
    assert jnp.allclose(out, ref_bf16, atol=1e-3, rtol=1e-3)

    # Full f32 reference (semantic check, looser tolerance due to bf16 MXU inputs).
    ref_f32 = jax.nn.log_softmax(x @ weight.T + bias, axis=-1)
    assert jnp.allclose(out, ref_f32, atol=3e-2, rtol=3e-2)

    # Log-probabilities must normalize.
    assert jnp.allclose(jnp.sum(jnp.exp(out), axis=-1), 1.0, atol=1e-3)

    print("KERNEL_OK")
</pallas_src>

<mosaic_0001>
module attributes {stable_mosaic.version = 11 : i64} {
  func.func @_ctc_decoder_kernel(%arg0: i32, %arg1: memref<8x32xbf16, #tpu.memory_space<vmem>>, %arg2: memref<32x128xbf16, #tpu.memory_space<vmem>>, %arg3: memref<1x128xf32, #tpu.memory_space<vmem>>, %arg4: memref<8x16xf32, #tpu.memory_space<vmem>>) attributes {dimension_semantics = [#tpu.dimension_semantics<parallel>], iteration_bounds = array<i64: 2>, scalar_prefetch = 0 : i64, scratch_operands = 0 : i64, tpu.core_type = #tpu.core_type<tc>, window_params = [{transform_indices = @transform_0, window_bounds = array<i64: 8, 32>}, {pipeline_mode = #tpu.pipeline_mode<synchronous>, transform_indices = @transform_1, window_bounds = array<i64: 32, 128>}, {pipeline_mode = #tpu.pipeline_mode<synchronous>, transform_indices = @transform_2, window_bounds = array<i64: 1, 128>}, {transform_indices = @transform_3, window_bounds = array<i64: 8, 16>}]} {
    %c0 = arith.constant 0 : index
    %c0_0 = arith.constant 0 : index
    %0 = vector.load %arg1[%c0, %c0_0] : memref<8x32xbf16, #tpu.memory_space<vmem>>, vector<8x32xbf16>
    %c0_1 = arith.constant 0 : index
    %c0_2 = arith.constant 0 : index
    %1 = vector.load %arg2[%c0_1, %c0_2] : memref<32x128xbf16, #tpu.memory_space<vmem>>, vector<32x128xbf16>
    %cst = arith.constant dense<0.000000e+00> : vector<8x128xf32>
    %2 = tpu.matmul %0, %1, %cst {dimension_numbers = #tpu.dot_dimension_numbers<[1], [0], [0], [1], [0, 0, 1, 1], [], []>} : vector<8x32xbf16>, vector<32x128xbf16>, vector<8x128xf32> -> vector<8x128xf32>
    %c0_3 = arith.constant 0 : index
    %c0_4 = arith.constant 0 : index
    %3 = vector.load %arg3[%c0_3, %c0_4] : memref<1x128xf32, #tpu.memory_space<vmem>>, vector<1x128xf32>
    %4 = vector.broadcast %3 : vector<1x128xf32> to vector<8x128xf32>
    %5 = arith.addf %2, %4 : vector<8x128xf32>
    %cst_5 = arith.constant dense<0xFF800000> : vector<8xf32>
    %6 = vector.multi_reduction <maximumf>, %5, %cst_5 [1] : vector<8x128xf32> to vector<8xf32>
    %7 = vector.shape_cast %6 : vector<8xf32> to vector<8x1xf32>
    %8 = vector.broadcast %7 : vector<8x1xf32> to vector<8x128xf32>
    %9 = arith.subf %5, %8 : vector<8x128xf32>
    %10 = math.exp %9 : vector<8x128xf32>
    %cst_6 = arith.constant dense<0.000000e+00> : vector<8xf32>
    %11 = vector.multi_reduction <add>, %10, %cst_6 [1] : vector<8x128xf32> to vector<8xf32>
    %12 = vector.shape_cast %11 : vector<8xf32> to vector<8x1xf32>
    %13 = math.log %12 : vector<8x1xf32>
    %14 = arith.addf %7, %13 : vector<8x1xf32>
    %15 = vector.broadcast %14 : vector<8x1xf32> to vector<8x128xf32>
    %16 = arith.subf %5, %15 : vector<8x128xf32>
    %17 = vector.extract_strided_slice %16 {offsets = [0, 0], sizes = [8, 16], strides = [1, 1]} : vector<8x128xf32> to vector<8x16xf32>
    %c0_7 = arith.constant 0 : index
    %c0_8 = arith.constant 0 : index
    %18 = vector.load %arg4[%c0_7, %c0_8] : memref<8x16xf32, #tpu.memory_space<vmem>>, vector<8x16xf32>
    tpu.vector_store %arg4[%c0_7, %c0_8], %17 {strides = array<i32>} : memref<8x16xf32, #tpu.memory_space<vmem>>, vector<8x16xf32>,
    return
  }
  func.func @transform_0(%arg0: i32) -> (i32, i32) {
    %c0_i32 = arith.constant 0 : i32
    %c0_i32_0 = arith.constant 0 : i32
    return %arg0, %c0_i32 : i32, i32
  }
  func.func @transform_1(%arg0: i32) -> (i32, i32) {
    %c0_i32 = arith.constant 0 : i32
    %c0_i32_0 = arith.constant 0 : i32
    %c0_i32_1 = arith.constant 0 : i32
    return %c0_i32, %c0_i32_0 : i32, i32
  }
  func.func @transform_2(%arg0: i32) -> (i32, i32) {
    %c0_i32 = arith.constant 0 : i32
    %c0_i32_0 = arith.constant 0 : i32
    %c0_i32_1 = arith.constant 0 : i32
    return %c0_i32, %c0_i32_0 : i32, i32
  }
  func.func @transform_3(%arg0: i32) -> (i32, i32) {
    %c0_i32 = arith.constant 0 : i32
    %c0_i32_0 = arith.constant 0 : i32
    return %arg0, %c0_i32 : i32, i32
  }
}

module attributes {stable_mosaic.version = 11 : i64} {
  func.func @_ctc_decoder_kernel(%arg0: i32, %arg1: memref<8x32xbf16, #tpu.memory_space<vmem>>, %arg2: memref<32x128xbf16, #tpu.memory_space<vmem>>, %arg3: memref<1x128xf32, #tpu.memory_space<vmem>>, %arg4: memref<8x16xf32, #tpu.memory_space<vmem>>) attributes {dimension_semantics = [#tpu.dimension_semantics<parallel>], iteration_bounds = array<i64: 2>, scalar_prefetch = 0 : i64, scratch_operands = 0 : i64, tpu.core_type = #tpu.core_type<tc>, window_params = [{transform_indices = @transform_0, window_bounds = array<i64: 8, 32>}, {pipeline_mode = #tpu.pipeline_mode<synchronous>, transform_indices = @transform_1, window_bounds = array<i64: 32, 128>}, {pipeline_mode = #tpu.pipeline_mode<synchronous>, transform_indices = @transform_2, window_bounds = array<i64: 1, 128>}, {transform_indices = @transform_3, window_bounds = array<i64: 8, 16>}]} {
    %c0 = arith.constant 0 : index
    %c0_0 = arith.constant 0 : index
    %0 = vector.load %arg1[%c0, %c0_0] : memref<8x32xbf16, #tpu.memory_space<vmem>>, vector<8x32xbf16>
    %c0_1 = arith.constant 0 : index
    %c0_2 = arith.constant 0 : index
    %1 = vector.load %arg2[%c0_1, %c0_2] : memref<32x128xbf16, #tpu.memory_space<vmem>>, vector<32x128xbf16>
    %cst = arith.constant dense<0.000000e+00> : vector<8x128xf32>
    %2 = tpu.matmul %0, %1, %cst {dimension_numbers = #tpu.dot_dimension_numbers<[1], [0], [0], [1], [0, 0, 1, 1], [], []>} : vector<8x32xbf16>, vector<32x128xbf16>, vector<8x128xf32> -> vector<8x128xf32>
    %c0_3 = arith.constant 0 : index
    %c0_4 = arith.constant 0 : index
    %3 = vector.load %arg3[%c0_3, %c0_4] : memref<1x128xf32, #tpu.memory_space<vmem>>, vector<1x128xf32>
    %4 = vector.broadcast %3 : vector<1x128xf32> to vector<8x128xf32>
    %5 = arith.addf %2, %4 : vector<8x128xf32>
    %cst_5 = arith.constant dense<0xFF800000> : vector<8xf32>
    %6 = vector.multi_reduction <maximumf>, %5, %cst_5 [1] : vector<8x128xf32> to vector<8xf32>
    %7 = vector.shape_cast %6 : vector<8xf32> to vector<8x1xf32>
    %8 = vector.broadcast %7 : vector<8x1xf32> to vector<8x128xf32>
    %9 = arith.subf %5, %8 : vector<8x128xf32>
    %10 = math.exp %9 : vector<8x128xf32>
    %cst_6 = arith.constant dense<0.000000e+00> : vector<8xf32>
    %11 = vector.multi_reduction <add>, %10, %cst_6 [1] : vector<8x128xf32> to vector<8xf32>
    %12 = vector.shape_cast %11 : vector<8xf32> to vector<8x1xf32>
    %13 = math.log %12 : vector<8x1xf32>
    %14 = arith.addf %7, %13 : vector<8x1xf32>
    %15 = vector.broadcast %14 : vector<8x1xf32> to vector<8x128xf32>
    %16 = arith.subf %5, %15 : vector<8x128xf32>
    %17 = vector.extract_strided_slice %16 {offsets = [0, 0], sizes = [8, 16], strides = [1, 1]} : vector<8x128xf32> to vector<8x16xf32>
    %c0_7 = arith.constant 0 : index
    %c0_8 = arith.constant 0 : index
    %18 = vector.load %arg4[%c0_7, %c0_8] : memref<8x16xf32, #tpu.memory_space<vmem>>, vector<8x16xf32>
    tpu.vector_store %arg4[%c0_7, %c0_8], %17 {strides = array<i32>} : memref<8x16xf32, #tpu.memory_space<vmem>>, vector<8x16xf32>,
    return
  }
  func.func @transform_0(%arg0: i32) -> (i32, i32) {
    %c0_i32 = arith.constant 0 : i32
    %c0_i32_0 = arith.constant 0 : i32
    return %arg0, %c0_i32 : i32, i32
  }
  func.func @transform_1(%arg0: i32) -> (i32, i32) {
    %c0_i32 = arith.constant 0 : i32
    %c0_i32_0 = arith.constant 0 : i32
    %c0_i32_1 = arith.constant 0 : i32
    return %c0_i32, %c0_i32_0 : i32, i32
  }
  func.func @transform_2(%arg0: i32) -> (i32, i32) {
    %c0_i32 = arith.constant 0 : i32
    %c0_i32_0 = arith.constant 0 : i32
    %c0_i32_1 = arith.constant 0 : i32
    return %c0_i32, %c0_i32_0 : i32, i32
  }
  func.func @transform_3(%arg0: i32) -> (i32, i32) {
    %c0_i32 = arith.constant 0 : i32
    %c0_i32_0 = arith.constant 0 : i32
    return %arg0, %c0_i32 : i32, i32
  }
}

</mosaic_0001>

<bundles_post_ra>
// kernel: tpu_custom_call.1
= control target key start
LH: loop header
LB: loop body
LE: loop exit
PB: predicated region body
PF: predicated region fallthrough
CT: control target
= control target key end

     0   :  { %8 = vsyncpa [#allocation3], 0  ;;  %s830_s0 = inlined_call_operand.hbm [shape: bf16[16,32], index: 0, kind: input, shape index: {}]   ;;  %s831_s1 = inlined_call_operand.hbm [shape: bf16[32,128], index: 1, kind: input, shape index: {}]   ;;  %s832_s2 = inlined_call_operand.vmem [shape: f32[1,128], index: 2, kind: input, shape index: {}]   ;;  %s833_s3 = inlined_call_operand.hbm [shape: f32[16,16], index: 3, kind: output, shape index: {}]  }
   0x1   :  { %10 = vsyncpa [#allocation3 + $0x1], 0 }
   0x2   :  { %11 = vsyncpa [#allocation6], 0 }
   0x3   :  { %12 = vsyncpa [#allocation4], 0 }
   0x4   :  { %14 = vsyncpa [#allocation4 + $0x1], 0  ;;  %s630_s12 = smov 0   ;;  %s632_s13 = smov 0  }
   0x5   :  { %s634_s14 = smov 0   ;;  %s636_s15 = smov 0  }
   0x6 LB: > { %s651_s16 = sadd.s32 4294967295, %s601_s15   ;;  %s377_s17 = sadd.s32 4294967294, %s601_s15   ;;  %s601_s15 = sphi %s636_s15, %s853_s15   ;;  %s597_s14 = sphi %s634_s14, %s852_s14   ;;  %s593_s13 = sphi %s632_s13, %s851_s13   ;;  %s589_s12 = sphi %s630_s12, %s850_s12  }
   0x7   : > { %p40_p0 = scmp.ne.s32.totalorder %s593_s13, %s589_s12  ;;  %p834_p1 = scmp.eq.s32.totalorder %s651_s16, 0 }
   0x8   : > { %p112_p3 = scmp.eq.s32.totalorder %s377_s17, 1  ;;  %p378_p5 = scmp.ge.s32.totalorder %s601_s15, 1 }
   0x9   : > { %p660_p4 = por %p834_p1, %p40_p0  ;;  %p119_p7 = scmp.lt.s32.totalorder %s601_s15, 3 }
   0xa   : > { %p665_p6 = por %p112_p3, %p40_p0  ;;  %s603_s21 = smov [#allocation5]  }
   0xb   : > { %s837_s18 = scalar_select %p660_p4, 1, 0 }
   0xc   : > { %s838_s19 = scalar_select %p665_p6, 1, 0 }
   0xd   : > { %p670_p8 = pnand %p378_p5, %p119_p7  ;;  %s131_s22 = sshll.u32 %s603_s21, 4  ;;  %s674_s22 = int_to_ptr.vmem [resolvable:$true] %s131_s22 }
   0xe   : > { %s686_s24 = sadd.s32 1, %s601_s15   ;;  %s27_s25 = sadd.s32 1, %s597_s14 }
   0xf   : > { %s839_s20 = scalar_select %p670_p8, 1, 0 }
  0x10   : > { %p414_p9 = pneg %p670_p8  ;;  %s24_s26 = ssub.s32 %s601_s15, %s686_s24 }
  0x11   : > { %s473_s29 = scalar_lea.hbm %s831_s1, 256 }
  0x12   : > { %p681_p11 = pnand %p414_p9, %p834_p1  ;;  %p474_p12 = scmp.ne.s32.totalorder %s831_s1, %s473_s29 }
  0x13   : > { %p480_p5 = scmp.lt.u32.totalorder %s473_s29, %s831_s1 }
  0x14   : > { %p475_p13 = pneg %p681_p11 }
  0x16   : > { %p476_p0 = pnand %p475_p13, %p474_p12 }
  0x18   : > { %p477_p3 = pneg %p476_p0 }
  0x1a   : > { %p482_p7 = pnand %p480_p5, %p477_p3 }
  0x1c   : > { %485 = shalt.err (!%p482_p7)
}
  0x1d   : > { %s486_s7 = scalar_lea.vmem %s674_s22, 256  ;;  %p494_p2 = scmp.lt.s32.totalorder %s674_s22, %s674_s22 }
  0x1e   : > { %p487_p9 = scmp.ne.s32.totalorder %s674_s22, %s486_s7  ;;  %p495_p6 = scmp.lt.s32.totalorder %s486_s7, %s486_s7 }
  0x20   : > { %p489_p10 = pnand %p487_p9, %p475_p13  ;;  %p496_p4 = por %p495_p6, %p494_p2 }
  0x22   : > { %p490_p1 = pneg %p489_p10 }
  0x24   : > { %p497_p8 = pnand %p496_p4, %p490_p1 }
  0x26   : > { %500 = shalt.err (!%p497_p8)
}
  0x27   : > { %s604_s8 = smov 64   ;;  %s605_s9 = smov 4  }
  0x28   : > { %417 = dma.hbm_to_vmem [thread:$0]  (!%p681_p11), %s831_s1, 256, %s674_s22, [#allocation6], %s604_s8, %s604_s8, %s605_s9  }
  0x29   : > { %p25_p2 = scmp.eq.s32.totalorder %s24_s26, 0  ;;  %p34_p1 = scmp.ne.s32.totalorder %s597_s14, %s593_s13 }
  0x2a   : > { %p35_p4 = scmp.eq.s32.totalorder %s601_s15, 0  ;;  %p427_p6 = scmp.lt.s32.totalorder %s601_s15, 2 }
  0x2b   : > { %s717_s17 = scalar_select %p25_p2, %s597_s14, %s27_s25  }
  0x2c   : > { %p36_p8 = por %p35_p4, %p34_p1  ;;  %p841_p10 = scmp.eq.s32.totalorder %s651_s16, 1 }
  0x2d   : > { %s148_s27 = sand.u32 1, %s597_s14   ;;  %s382_s28 = sshll.u32 %s601_s15, 6 }
  0x2e   : > { %p721_p12 = por %p841_p10, %p34_p1  ;;  %s381_s29 = sshll.u32 %s148_s27, 2 }
  0x2f   : > { %s730_s4 = scalar_lea.hbm %s830_s0, %s382_s28  ;;  %s152_s22 = scalar_lea.vmem [#allocation2], %s381_s29 }
  0x30   : > { %s159_s25 = sshll.u32 %s152_s22, 4  ;;  %p732_p11 = pnand %p427_p6, %p36_p8  ;;  %s736_s25 = int_to_ptr.vmem [resolvable:$true] %s159_s25 }
  0x31   : > { %s149_s5 = scalar_lea.sflag [#allocation3], %s148_s27  ;;  %s501_s6 = scalar_lea.hbm %s730_s4, 64 }
  0x32   : > { %p502_p13 = scmp.ne.s32.totalorder %s730_s4, %s501_s6  ;;  %p503_p0 = pneg %p732_p11 }
  0x33   : > { %s506_s9 = scalar_lea.hbm %s830_s0, 128  ;;  %p507_p7 = scmp.lt.u32.totalorder %s730_s4, %s830_s0 }
  0x34   : > { %p504_p3 = pnand %p503_p0, %p502_p13  ;;  %p508_p9 = scmp.lt.u32.totalorder %s506_s9, %s501_s6 }
  0x35   : > { %p510_p1 = scmp.lt.u32.totalorder %s501_s6, %s730_s4 }
  0x36   : > { %p505_p5 = pneg %p504_p3  ;;  %p509_p2 = por %p508_p9, %p507_p7 }
  0x38   : > { %p511_p4 = por %p510_p1, %p509_p2 }
  0x3a   : > { %p512_p6 = pnand %p511_p4, %p505_p5 }
  0x3c   : > { %515 = shalt.err (!%p512_p6)
}
  0x3d   : > { %s516_s27 = scalar_lea.vmem %s736_s25, 64  ;;  %s606_s28 = smov [#allocation2]  }
  0x3e   : > { %p517_p8 = scmp.ne.s32.totalorder %s736_s25, %s516_s27  ;;  %s521_s29 = sshll.u32 %s606_s28, 4  ;;  %s522_s29 = int_to_ptr.vmem [resolvable:$false] %s521_s29 }
  0x3f   : > { %s523_s23 = scalar_lea.vmem %s522_s29, 128  ;;  %p524_p3 = scmp.lt.s32.totalorder %s736_s25, %s522_s29 }
  0x40   : > { %p519_p10 = pnand %p517_p8, %p503_p0  ;;  %p525_p7 = scmp.lt.s32.totalorder %s523_s23, %s516_s27 }
  0x42   : > { %p520_p13 = pneg %p519_p10  ;;  %p526_p9 = por %p525_p7, %p524_p3 }
  0x44   : > { %p527_p2 = pnand %p526_p9, %p520_p13 }
  0x46   : > { %530 = shalt.err (!%p527_p2)
}
  0x47   : > { %421 = dma.hbm_to_vmem [thread:$0]  (!%p732_p11), %s730_s4, 64, %s736_s25, %s149_s5  }
  0x48   : > { %p844_p5 = scmp.ne.s32.totalorder %s839_s20, 0 }
  0x49   : > { %s766_s30 = sand.u32 (!%p844_p5), 1, %s593_s13   ;;  %p845_p0 = scmp.ne.s32.totalorder (!%p844_p5), %s837_s18, 0 }
  0x4a   : > { %168 = sbr.rel (%p844_p5) target bundleno = 638 (0x27e), region = 32  ;;  %s384_s22 = sshll.u32 (!%p844_p5), %s766_s30, 2 }
  0x4b   : > { %s171_s6 = scalar_lea.sflag (!%p844_p5), [#allocation3], %s766_s30  ;;  %s174_s7 = scalar_lea.vmem (!%p844_p5), [#allocation2], %s384_s22 }
  0x51   : > { %576 = dma.done.wait (%p845_p0), %s171_s6, 64  }
  0x52   : > { %578 = vsyncadd (%p845_p0), %s171_s6, 4294967232  ;;  %p846_p1 = scmp.eq.s32.totalorder %s651_s16, 0 }
  0x54   : > { %580 = dma.done.wait (%p846_p1), [#allocation6], 256   ;;  %p847_p11 = pmov %p846_p1 }
  0x55   : > { %v607_v0 = vmov 0.0   ;;  %vm608_vm0 = vmmov 0   ;;  %v467_v1 = vld [vmem:[#allocation5] sm:$0xff]   ;;  %v468_v2 = vld [vmem:[#allocation5 + $0x8] sm:$0xff]   ;;  %v202_v3 = vld [vmem:[%s174_s7] sm:$0xf] }
  0x56   : > { %582 = vsyncadd (%p847_p11), [#allocation6], 4294967040  ;;  %398 = vmatprep.subr.bf16.mxu0 %v607_v0  ;;  %402 = vmatprep.mubr.msk.bf16.mxu0 %vm608_vm0, %v607_v0  ;;  %vm226_vm1 = vcmask 261120   ;;  %v387_v4 = vld [vmem:[%s832_s2] ss:$0 sm:$0xff]  ;;  %s386_s4 = sshll.u32 %s766_s30, 3 }
  0x57   : > { %399 = vmatpush3.bf16.msra.mxu0 %v467_v1  ;;  %s392_s25 = sshll.u32 %s651_s16, 7  ;;  %s200_s26 = scalar_lea.vmem [#allocation7], %s386_s4  ;;  %vm281_vm2 = vcmask 130048  }
  0x58   : > { %400 = vmatprep.subr.bf16.mxu0 %v607_v0  ;;  %s297_s5 = sshll.u32 %s200_s26, 4  ;;  %s786_s10 = scalar_lea.hbm %s833_s3, %s392_s25  ;;  %s788_s5 = int_to_ptr.vmem [resolvable:$true] %s297_s5 }
  0x59   : > { %s284_s11 = scalar_lea.sflag [#allocation4], %s766_s30  ;;  %s531_s27 = scalar_lea.vmem %s788_s5, 128 }
  0x5a   : > { %p532_p4 = scmp.ne.s32.totalorder %s788_s5, %s531_s27  ;;  %s609_s16 = smov [#allocation7]  }
  0x5b   : > { %401 = vmatpush3.bf16.msra.mxu0 %v468_v2  ;;  %s535_s28 = sshll.u32 %s609_s16, 4  ;;  %s536_s28 = int_to_ptr.vmem [resolvable:$false] %s535_s28 }
  0x5c   : > { %p533_p6 = pnand %p532_p4, %p721_p12  ;;  %s537_s29 = scalar_lea.vmem %s536_s28, 256 }
  0x5d   : > { %p538_p10 = scmp.lt.s32.totalorder %s788_s5, %s536_s28  ;;  %p539_p13 = scmp.lt.s32.totalorder %s537_s29, %s531_s27 }
  0x5e   : > { %403 = vmatmul.mubr.msk.bf16.vlgmr.msra.gmra.mrb[0].mxu0 %vm226_vm1, %v202_v3  ;;  %p534_p8 = pneg %p533_p6 }
  0x5f   : > { %p540_p3 = por %p539_p13, %p538_p10 }
  0x61   : > { %p541_p7 = pnand %p540_p3, %p534_p8 }
 0x131   : > { %v264_v5 = vpop.f32.mrb[0].mxu0 }
 0x132   : > { %v265_v6 = vadd.f32 %v387_v4, %v264_v5  ;;  %v404_v7 = vpop.f32.mrb[1].mxu0 }
 0x133   : > { %v267_v8 = vpop.f32.mrb[2].mxu0 }
 0x134   : > { %270 = vmax.xlane.f32.xlu0 %v265_v6  ;;  %v405_v9 = vpop.f32.mrb[3].mxu0 }
 0x1c1   : > { %v271_v10 = vpop.xlane.xlu0 %270 }
 0x1c2   : > { %v272_v11 = vsub.f32 %v265_v6, %v271_v10 }
 0x1c4   : > { %v273_v12 = vmul.f32 1.442695, %v272_v11 }
 0x1c6   : > { %469 = vpow2.f32 %v273_v12 }
 0x1d0   : > { %v470_v13 = vpop.eup %469 }
 0x1d1   : > { %275 = vadd.xlane.f32.xlu0 %v470_v13 }
 0x25e   : > { %v276_v14 = vpop.xlane.xlu0 %275 }
 0x25f   : > { %471 = vlog2.f32 %v276_v14 }
 0x269   : > { %v472_v15 = vpop.eup %471 }
 0x26a   : > { %v278_v16 = vmul.f32 0.6931472, %v472_v15 }
 0x26c   : > { %v279_v17 = vadd.f32 %v278_v16, %v271_v10 }
 0x26e   : > { %v280_v18 = vsub.f32 %v265_v6, %v279_v17 }
 0x270   : > { %282 = vst.msk [vmem:[%s200_s26] sm:$0xff] %vm281_vm2, %v280_v18 }
 0x271   : > { %544 = shalt.err (!%p541_p7)
}
 0x272   : > { %s545_s23 = scalar_lea.hbm %s786_s10, 128  ;;  %s549_s6 = scalar_lea.hbm %s833_s3, 256 }
 0x273   : > { %p546_p9 = scmp.ne.s32.totalorder %s786_s10, %s545_s23  ;;  %p550_p0 = scmp.lt.u32.totalorder %s786_s10, %s833_s3 }
 0x274   : > { %p551_p1 = scmp.lt.u32.totalorder %s549_s6, %s545_s23  ;;  %p553_p4 = scmp.lt.u32.totalorder %s545_s23, %s786_s10 }
 0x275   : > { %p547_p2 = pnand %p546_p9, %p721_p12 }
 0x276   : > { %p552_p11 = por %p551_p1, %p550_p0 }
 0x277   : > { %p548_p5 = pneg %p547_p2 }
 0x278   : > { %p554_p6 = por %p553_p4, %p552_p11 }
 0x27a   : > { %p555_p8 = pnand %p554_p6, %p548_p5 }
 0x27c   : > { %558 = shalt.err (!%p555_p8)
}
 0x27d   : > { %412 = dma.vmem_to_hbm [thread:$0]  (%p721_p12), %s788_s5, 128, %s786_s10, %s284_s11  }
 0x27e PF: > { %s309_s20 = sand.u32 1, %s589_s12   ;;  %p848_p10 = scmp.ne.s32.totalorder %s838_s19, 0 }
 0x27f   : > { %p849_p13 = scmp.ge.s32.totalorder %s601_s15, 2  ;;  %s310_s4 = scalar_lea.sflag [#allocation4], %s309_s20 }
 0x281   : > { %p423_p3 = pnand %p849_p13, %p848_p10 }
 0x283   : > { %584 = dma.done.wait (!%p423_p3), %s310_s4, 128  }
 0x284   : > { %586 = vsyncadd (!%p423_p3), %s310_s4, 4294967168  ;;  %p17_p7 = scmp.ge.s32.totalorder %s686_s24, 4   ;;  %s850_s12 = smov %s593_s13 }
 0x285   : > { %s851_s13 = smov %s597_s14  ;;  %s852_s14 = smov %s717_s17 }
 0x286   : > { %s853_s15 = smov %s686_s24  ;;  %19 = sbr.rel (!%p17_p7) target bundleno = 6 (0x6), region = 81 }
 0x28d   :  { %315 = vsyncpa [#allocation3], 1 }
 0x28e   :  { %317 = vsyncpa [#allocation3 + $0x1], 1 }
 0x28f   :  { %318 = vsyncpa [#allocation6], 1 }
 0x290   :  { %319 = vsyncpa [#allocation4], 1 }
 0x291   :  { %321 = vsyncpa [#allocation4 + $0x1], 1 }

// kernel: tpu_custom_call.1
= control target key start
LH: loop header
LB: loop body
LE: loop exit
PB: predicated region body
PF: predicated region fallthrough
CT: control target
= control target key end

     0   :  { %8 = vsyncpa [#allocation3], 0  ;;  %s830_s0 = inlined_call_operand.hbm [shape: bf16[16,32], index: 0, kind: input, shape index: {}]   ;;  %s831_s1 = inlined_call_operand.hbm [shape: bf16[32,128], index: 1, kind: input, shape index: {}]   ;;  %s832_s2 = inlined_call_operand.vmem [shape: f32[1,128], index: 2, kind: input, shape index: {}]   ;;  %s833_s3 = inlined_call_operand.hbm [shape: f32[16,16], index: 3, kind: output, shape index: {}]  }
   0x1   :  { %10 = vsyncpa [#allocation3 + $0x1], 0 }
   0x2   :  { %11 = vsyncpa [#allocation6], 0 }
   0x3   :  { %12 = vsyncpa [#allocation4], 0 }
   0x4   :  { %14 = vsyncpa [#allocation4 + $0x1], 0  ;;  %s630_s12 = smov 0   ;;  %s632_s13 = smov 0  }
   0x5   :  { %s634_s14 = smov 0   ;;  %s636_s15 = smov 0  }
   0x6 LB: > { %s651_s16 = sadd.s32 4294967295, %s601_s15   ;;  %s377_s17 = sadd.s32 4294967294, %s601_s15   ;;  %s601_s15 = sphi %s636_s15, %s853_s15   ;;  %s597_s14 = sphi %s634_s14, %s852_s14   ;;  %s593_s13 = sphi %s632_s13, %s851_s13   ;;  %s589_s12 = sphi %s630_s12, %s850_s12  }
   0x7   : > { %p40_p0 = scmp.ne.s32.totalorder %s593_s13, %s589_s12  ;;  %p834_p1 = scmp.eq.s32.totalorder %s651_s16, 0 }
   0x8   : > { %p112_p3 = scmp.eq.s32.totalorder %s377_s17, 1  ;;  %p378_p5 = scmp.ge.s32.totalorder %s601_s15, 1 }
   0x9   : > { %p660_p4 = por %p834_p1, %p40_p0  ;;  %p119_p7 = scmp.lt.s32.totalorder %s601_s15, 3 }
   0xa   : > { %p665_p6 = por %p112_p3, %p40_p0  ;;  %s603_s21 = smov [#allocation5]  }
   0xb   : > { %s837_s18 = scalar_select %p660_p4, 1, 0 }
   0xc   : > { %s838_s19 = scalar_select %p665_p6, 1, 0 }
   0xd   : > { %p670_p8 = pnand %p378_p5, %p119_p7  ;;  %s131_s22 = sshll.u32 %s603_s21, 4  ;;  %s674_s22 = int_to_ptr.vmem [resolvable:$true] %s131_s22 }
   0xe   : > { %s686_s24 = sadd.s32 1, %s601_s15   ;;  %s27_s25 = sadd.s32 1, %s597_s14 }
   0xf   : > { %s839_s20 = scalar_select %p670_p8, 1, 0 }
  0x10   : > { %p414_p9 = pneg %p670_p8  ;;  %s24_s26 = ssub.s32 %s601_s15, %s686_s24 }
  0x11   : > { %s473_s29 = scalar_lea.hbm %s831_s1, 256 }
  0x12   : > { %p681_p11 = pnand %p414_p9, %p834_p1  ;;  %p474_p12 = scmp.ne.s32.totalorder %s831_s1, %s473_s29 }
  0x13   : > { %p480_p5 = scmp.lt.u32.totalorder %s473_s29, %s831_s1 }
  0x14   : > { %p475_p13 = pneg %p681_p11 }
  0x16   : > { %p476_p0 = pnand %p475_p13, %p474_p12 }
  0x18   : > { %p477_p3 = pneg %p476_p0 }
  0x1a   : > { %p482_p7 = pnand %p480_p5, %p477_p3 }
  0x1c   : > { %485 = shalt.err (!%p482_p7)
}
  0x1d   : > { %s486_s7 = scalar_lea.vmem %s674_s22, 256  ;;  %p494_p2 = scmp.lt.s32.totalorder %s674_s22, %s674_s22 }
  0x1e   : > { %p487_p9 = scmp.ne.s32.totalorder %s674_s22, %s486_s7  ;;  %p495_p6 = scmp.lt.s32.totalorder %s486_s7, %s486_s7 }
  0x20   : > { %p489_p10 = pnand %p487_p9, %p475_p13  ;;  %p496_p4 = por %p495_p6, %p494_p2 }
  0x22   : > { %p490_p1 = pneg %p489_p10 }
  0x24   : > { %p497_p8 = pnand %p496_p4, %p490_p1 }
  0x26   : > { %500 = shalt.err (!%p497_p8)
}
  0x27   : > { %s604_s8 = smov 64   ;;  %s605_s9 = smov 4  }
  0x28   : > { %417 = dma.hbm_to_vmem [thread:$0]  (!%p681_p11), %s831_s1, 256, %s674_s22, [#allocation6], %s604_s8, %s604_s8, %s605_s9  }
  0x29   : > { %p25_p2 = scmp.eq.s32.totalorder %s24_s26, 0  ;;  %p34_p1 = scmp.ne.s32.totalorder %s597_s14, %s593_s13 }
  0x2a   : > { %p35_p4 = scmp.eq.s32.totalorder %s601_s15, 0  ;;  %p427_p6 = scmp.lt.s32.totalorder %s601_s15, 2 }
  0x2b   : > { %s717_s17 = scalar_select %p25_p2, %s597_s14, %s27_s25  }
  0x2c   : > { %p36_p8 = por %p35_p4, %p34_p1  ;;  %p841_p10 = scmp.eq.s32.totalorder %s651_s16, 1 }
  0x2d   : > { %s148_s27 = sand.u32 1, %s597_s14   ;;  %s382_s28 = sshll.u32 %s601_s15, 6 }
  0x2e   : > { %p721_p12 = por %p841_p10, %p34_p1  ;;  %s381_s29 = sshll.u32 %s148_s27, 2 }
  0x2f   : > { %s730_s4 = scalar_lea.hbm %s830_s0, %s382_s28  ;;  %s152_s22 = scalar_lea.vmem [#allocation2], %s381_s29 }
  0x30   : > { %s159_s25 = sshll.u32 %s152_s22, 4  ;;  %p732_p11 = pnand %p427_p6, %p36_p8  ;;  %s736_s25 = int_to_ptr.vmem [resolvable:$true] %s159_s25 }
  0x31   : > { %s149_s5 = scalar_lea.sflag [#allocation3], %s148_s27  ;;  %s501_s6 = scalar_lea.hbm %s730_s4, 64 }
  0x32   : > { %p502_p13 = scmp.ne.s32.totalorder %s730_s4, %s501_s6  ;;  %p503_p0 = pneg %p732_p11 }
  0x33   : > { %s506_s9 = scalar_lea.hbm %s830_s0, 128  ;;  %p507_p7 = scmp.lt.u32.totalorder %s730_s4, %s830_s0 }
  0x34   : > { %p504_p3 = pnand %p503_p0, %p502_p13  ;;  %p508_p9 = scmp.lt.u32.totalorder %s506_s9, %s501_s6 }
  0x35   : > { %p510_p1 = scmp.lt.u32.totalorder %s501_s6, %s730_s4 }
  0x36   : > { %p505_p5 = pneg %p504_p3  ;;  %p509_p2 = por %p508_p9, %p507_p7 }
  0x38   : > { %p511_p4 = por %p510_p1, %p509_p2 }
  0x3a   : > { %p512_p6 = pnand %p511_p4, %p505_p5 }
  0x3c   : > { %515 = shalt.err (!%p512_p6)
}
  0x3d   : > { %s516_s27 = scalar_lea.vmem %s736_s25, 64  ;;  %s606_s28 = smov [#allocation2]  }
  0x3e   : > { %p517_p8 = scmp.ne.s32.totalorder %s736_s25, %s516_s27  ;;  %s521_s29 = sshll.u32 %s606_s28, 4  ;;  %s522_s29 = int_to_ptr.vmem [resolvable:$false] %s521_s29 }
  0x3f   : > { %s523_s23 = scalar_lea.vmem %s522_s29, 128  ;;  %p524_p3 = scmp.lt.s32.totalorder %s736_s25, %s522_s29 }
  0x40   : > { %p519_p10 = pnand %p517_p8, %p503_p0  ;;  %p525_p7 = scmp.lt.s32.totalorder %s523_s23, %s516_s27 }
  0x42   : > { %p520_p13 = pneg %p519_p10  ;;  %p526_p9 = por %p525_p7, %p524_p3 }
  0x44   : > { %p527_p2 = pnand %p526_p9, %p520_p13 }
  0x46   : > { %530 = shalt.err (!%p527_p2)
}
  0x47   : > { %421 = dma.hbm_to_vmem [thread:$0]  (!%p732_p11), %s730_s4, 64, %s736_s25, %s149_s5  }
  0x48   : > { %p844_p5 = scmp.ne.s32.totalorder %s839_s20, 0 }
  0x49   : > { %s766_s30 = sand.u32 (!%p844_p5), 1, %s593_s13   ;;  %p845_p0 = scmp.ne.s32.totalorder (!%p844_p5), %s837_s18, 0 }
  0x4a   : > { %168 = sbr.rel (%p844_p5) target bundleno = 638 (0x27e), region = 32  ;;  %s384_s22 = sshll.u32 (!%p844_p5), %s766_s30, 2 }
  0x4b   : > { %s171_s6 = scalar_lea.sflag (!%p844_p5), [#allocation3], %s766_s30  ;;  %s174_s7 = scalar_lea.vmem (!%p844_p5), [#allocation2], %s384_s22 }
  0x51   : > { %576 = dma.done.wait (%p845_p0), %s171_s6, 64  }
  0x52   : > { %578 = vsyncadd (%p845_p0), %s171_s6, 4294967232  ;;  %p846_p1 = scmp.eq.s32.totalorder %s651_s16, 0 }
  0x54   : > { %580 = dma.done.wait (%p846_p1), [#allocation6], 256   ;;  %p847_p11 = pmov %p846_p1 }
  0x55   : > { %v607_v0 = vmov 0.0   ;;  %vm608_vm0 = vmmov 0   ;;  %v467_v1 = vld [vmem:[#allocation5] sm:$0xff]   ;;  %v468_v2 = vld [vmem:[#allocation5 + $0x8] sm:$0xff]   ;;  %v202_v3 = vld [vmem:[%s174_s7] sm:$0xf] }
  0x56   : > { %582 = vsyncadd (%p847_p11), [#allocation6], 4294967040  ;;  %398 = vmatprep.subr.bf16.mxu0 %v607_v0  ;;  %402 = vmatprep.mubr.msk.bf16.mxu0 %vm608_vm0, %v607_v0  ;;  %vm226_vm1 = vcmask 261120   ;;  %v387_v4 = vld [vmem:[%s832_s2] ss:$0 sm:$0xff]  ;;  %s386_s4 = sshll.u32 %s766_s30, 3 }
  0x57   : > { %399 = vmatpush3.bf16.msra.mxu0 %v467_v1  ;;  %s392_s25 = sshll.u32 %s651_s16, 7  ;;  %s200_s26 = scalar_lea.vmem [#allocation7], %s386_s4  ;;  %vm281_vm2 = vcmask 130048  }
  0x58   : > { %400 = vmatprep.subr.bf16.mxu0 %v607_v0  ;;  %s297_s5 = sshll.u32 %s200_s26, 4  ;;  %s786_s10 = scalar_lea.hbm %s833_s3, %s392_s25  ;;  %s788_s5 = int_to_ptr.vmem [resolvable:$true] %s297_s5 }
  0x59   : > { %s284_s11 = scalar_lea.sflag [#allocation4], %s766_s30  ;;  %s531_s27 = scalar_lea.vmem %s788_s5, 128 }
  0x5a   : > { %p532_p4 = scmp.ne.s32.totalorder %s788_s5, %s531_s27  ;;  %s609_s16 = smov [#allocation7]  }
  0x5b   : > { %401 = vmatpush3.bf16.msra.mxu0 %v468_v2  ;;  %s535_s28 = sshll.u32 %s609_s16, 4  ;;  %s536_s28 = int_to_ptr.vmem [resolvable:$false] %s535_s28 }
  0x5c   : > { %p533_p6 = pnand %p532_p4, %p721_p12  ;;  %s537_s29 = scalar_lea.vmem %s536_s28, 256 }
  0x5d   : > { %p538_p10 = scmp.lt.s32.totalorder %s788_s5, %s536_s28  ;;  %p539_p13 = scmp.lt.s32.totalorder %s537_s29, %s531_s27 }
  0x5e   : > { %403 = vmatmul.mubr.msk.bf16.vlgmr.msra.gmra.mrb[0].mxu0 %vm226_vm1, %v202_v3  ;;  %p534_p8 = pneg %p533_p6 }
  0x5f   : > { %p540_p3 = por %p539_p13, %p538_p10 }
  0x61   : > { %p541_p7 = pnand %p540_p3, %p534_p8 }
 0x131   : > { %v264_v5 = vpop.f32.mrb[0].mxu0 }
 0x132   : > { %v265_v6 = vadd.f32 %v387_v4, %v264_v5  ;;  %v404_v7 = vpop.f32.mrb[1].mxu0 }
 0x133   : > { %v267_v8 = vpop.f32.mrb[2].mxu0 }
 0x134   : > { %270 = vmax.xlane.f32.xlu0 %v265_v6  ;;  %v405_v9 = vpop.f32.mrb[3].mxu0 }
 0x1c1   : > { %v271_v10 = vpop.xlane.xlu0 %270 }
 0x1c2   : > { %v272_v11 = vsub.f32 %v265_v6, %v271_v10 }
 0x1c4   : > { %v273_v12 = vmul.f32 1.442695, %v272_v11 }
 0x1c6   : > { %469 = vpow2.f32 %v273_v12 }
 0x1d0   : > { %v470_v13 = vpop.eup %469 }
 0x1d1   : > { %275 = vadd.xlane.f32.xlu0 %v470_v13 }
 0x25e   : > { %v276_v14 = vpop.xlane.xlu0 %275 }
 0x25f   : > { %471 = vlog2.f32 %v276_v14 }
 0x269   : > { %v472_v15 = vpop.eup %471 }
 0x26a   : > { %v278_v16 = vmul.f32 0.6931472, %v472_v15 }
 0x26c   : > { %v279_v17 = vadd.f32 %v278_v16, %v271_v10 }
 0x26e   : > { %v280_v18 = vsub.f32 %v265_v6, %v279_v17 }
 0x270   : > { %282 = vst.msk [vmem:[%s200_s26] sm:$0xff] %vm281_vm2, %v280_v18 }
 0x271   : > { %544 = shalt.err (!%p541_p7)
}
 0x272   : > { %s545_s23 = scalar_lea.hbm %s786_s10, 128  ;;  %s549_s6 = scalar_lea.hbm %s833_s3, 256 }
 0x273   : > { %p546_p9 = scmp.ne.s32.totalorder %s786_s10, %s545_s23  ;;  %p550_p0 = scmp.lt.u32.totalorder %s786_s10, %s833_s3 }
 0x274   : > { %p551_p1 = scmp.lt.u32.totalorder %s549_s6, %s545_s23  ;;  %p553_p4 = scmp.lt.u32.totalorder %s545_s23, %s786_s10 }
 0x275   : > { %p547_p2 = pnand %p546_p9, %p721_p12 }
 0x276   : > { %p552_p11 = por %p551_p1, %p550_p0 }
 0x277   : > { %p548_p5 = pneg %p547_p2 }
 0x278   : > { %p554_p6 = por %p553_p4, %p552_p11 }
 0x27a   : > { %p555_p8 = pnand %p554_p6, %p548_p5 }
 0x27c   : > { %558 = shalt.err (!%p555_p8)
}
 0x27d   : > { %412 = dma.vmem_to_hbm [thread:$0]  (%p721_p12), %s788_s5, 128, %s786_s10, %s284_s11  }
 0x27e PF: > { %s309_s20 = sand.u32 1, %s589_s12   ;;  %p848_p10 = scmp.ne.s32.totalorder %s838_s19, 0 }
 0x27f   : > { %p849_p13 = scmp.ge.s32.totalorder %s601_s15, 2  ;;  %s310_s4 = scalar_lea.sflag [#allocation4], %s309_s20 }
 0x281   : > { %p423_p3 = pnand %p849_p13, %p848_p10 }
 0x283   : > { %584 = dma.done.wait (!%p423_p3), %s310_s4, 128  }
 0x284   : > { %586 = vsyncadd (!%p423_p3), %s310_s4, 4294967168  ;;  %p17_p7 = scmp.ge.s32.totalorder %s686_s24, 4   ;;  %s850_s12 = smov %s593_s13 }
 0x285   : > { %s851_s13 = smov %s597_s14  ;;  %s852_s14 = smov %s717_s17 }
 0x286   : > { %s853_s15 = smov %s686_s24  ;;  %19 = sbr.rel (!%p17_p7) target bundleno = 6 (0x6), region = 81 }
 0x28d   :  { %315 = vsyncpa [#allocation3], 1 }
 0x28e   :  { %317 = vsyncpa [#allocation3 + $0x1], 1 }
 0x28f   :  { %318 = vsyncpa [#allocation6], 1 }
 0x290   :  { %319 = vsyncpa [#allocation4], 1 }
 0x291   :  { %321 = vsyncpa [#allocation4 + $0x1], 1 }

</bundles_post_ra>
